<compile_context>
chip_gen: v7x
topology: tpu7x:2x2x1
jax: 0.10.0
libtpu: 0.0.40
codegen_flags: <defaults>
</compile_context>

<pallas_src>
import jax
import jax.numpy as jnp
from jax.experimental import pallas as pl
from jax.experimental.pallas import tpu as pltpu

LANE = 128
SUBLANE = 16  # bf16 sublane packing


def _round_up(v, m):
    return ((v + m - 1) // m) * m


# ---------------------------------------------------------------------------
# Fused Pallas kernel: all GCN layers + mean-pool + final Linear in one call.
# ---------------------------------------------------------------------------

def gcn_fused_kernel(adj_hbm, x_ref, w_ref, b_ref, pool_ref, lin_w_ref,
                     lin_b_ref, out_ref, adj_vmem, adj_sem):
    """adj_hbm   [Np, Np]   bf16  normalized adjacency, raw HBM ref (pl.ANY)
       x_ref     [Np, D]    bf16  zero-padded node features
       w_ref     [L, D, D]  bf16  stacked zero-padded layer weights
       b_ref     [L, 1, D]  f32   stacked zero-padded layer biases
       pool_ref  [Gp, Np]   bf16  mean-pool matrix (1/|graph| entries)
       lin_w_ref [D, Op]    bf16
       lin_b_ref [1, Op]    f32
       out_ref   [Gp, Op]   f32
       adj_vmem  [Np, Np]   bf16  VMEM scratch for the adjacency
       adj_sem   DMA semaphore
    """
    # Kick off the O(Np^2) adjacency DMA first; it is the dominant byte count.
    adj_cp = pltpu.make_async_copy(adj_hbm, adj_vmem, adj_sem)
    adj_cp.start()

    num_layers = w_ref.shape[0]
    h = x_ref[...]                                            # [Np, D] bf16, lives in VMEM

    # Layer 0's feature transform does not need the adjacency -> it overlaps
    # the adjacency DMA.
    xp = jnp.dot(h, w_ref[0], preferred_element_type=jnp.float32)  # [Np, D] f32

    adj_cp.wait()
    adj = adj_vmem[...]                                       # [Np, Np] bf16

    for layer in range(num_layers):                           # static unroll (small L)
        if layer > 0:
            xp = jnp.dot(h, w_ref[layer],
                         preferred_element_type=jnp.float32)  # [Np, D] f32 (MXU)
        agg = jnp.dot(adj, xp.astype(jnp.bfloat16),
                      preferred_element_type=jnp.float32)     # [Np, D] f32
        # GCNConv bias + .relu(); carry bf16 between layers (f32 MXU accum).
        # NOTE: padded (non-existent) node rows end up as relu(bias) != 0;
        # harmless because the pool matrix has zero columns for them.
        h = jnp.maximum(agg + b_ref[layer], 0.0).astype(jnp.bfloat16)

    pooled = jnp.dot(pool_ref[...], h,
                     preferred_element_type=jnp.float32)      # [Gp, D] f32
    # Dropout(p=0.5) in eval mode is the identity.
    # TODO(synk): training-mode dropout would use pltpu.prng_random_bits.
    out_ref[...] = jnp.dot(pooled.astype(jnp.bfloat16), lin_w_ref[...],
                           preferred_element_type=jnp.float32) + lin_b_ref[...]


_VMEM = pl.BlockSpec(memory_space=pltpu.MemorySpace.VMEM)
_ANY = pl.BlockSpec(memory_space=pl.ANY)


def gcn_forward(packed, x_pad, adj_pad_bf16, pool_pad_bf16, num_graphs,
                out_feats):
    """Runs the fused kernel once on pre-padded operands."""
    n_pad, d_pad = x_pad.shape
    g_pad = pool_pad_bf16.shape[0]
    out_pad = packed["lin_w"].shape[-1]
    num_layers = packed["w_stack"].shape[0]

    # Resident-set sizing for vmem_limit_bytes (bytes), with headroom.
    resident = (
        2 * n_pad * n_pad                       # adj bf16 scratch
        + 2 * n_pad * n_pad                     # adj input buffer (ANY may still stage)
        + 2 * n_pad * d_pad                     # x bf16
        + 2 * num_layers * d_pad * d_pad        # weights bf16
        + 4 * num_layers * d_pad                # biases f32
        + 2 * g_pad * n_pad                     # pool bf16
        + 2 * d_pad * out_pad + 4 * out_pad     # lin params
        + 4 * g_pad * out_pad                   # output f32
        + 3 * 4 * n_pad * d_pad                 # h / xp / agg intermediates
    )
    vmem_limit = int(min(max(2 * resident, 16 << 20), 100 << 20))

    flops = (
        num_layers * (2 * n_pad * d_pad * d_pad + 2 * n_pad * n_pad * d_pad)
        + 2 * g_pad * n_pad * d_pad
        + 2 * g_pad * d_pad * out_pad
    )
    bytes_accessed = (
        2 * n_pad * n_pad + 2 * n_pad * d_pad + 2 * num_layers * d_pad * d_pad
        + 4 * num_layers * d_pad + 2 * g_pad * n_pad
        + 2 * d_pad * out_pad + 4 * out_pad + 4 * g_pad * out_pad
    )

    out = pl.pallas_call(
        gcn_fused_kernel,
        out_shape=jax.ShapeDtypeStruct((g_pad, out_pad), jnp.float32),
        in_specs=[_ANY] + [_VMEM] * 6,
        out_specs=_VMEM,
        scratch_shapes=[
            pltpu.VMEM((n_pad, n_pad), jnp.bfloat16),   # adjacency landing buffer
            pltpu.SemaphoreType.DMA(()),
        ],
        compiler_params=pltpu.CompilerParams(vmem_limit_bytes=vmem_limit),
        cost_estimate=pl.CostEstimate(flops=flops, transcendentals=0,
                                      bytes_accessed=bytes_accessed),
        # Whole problem fits in VMEM at these sizes; one gridless fused call
        # removes per-layer launch + HBM round-trip overhead.
        # TODO(synk): for Np beyond the VMEM ceiling (~1.4x lower on v7x),
        # tile destination rows with a grid marked "parallel" (2 TCs on v7x)
        # and accumulate per-row-tile; block-sparse adj tiles for real graphs.
    )(adj_pad_bf16, x_pad, packed["w_stack"], packed["b_stack"],
      pool_pad_bf16, packed["lin_w"], packed["lin_b"])

    return out[:num_graphs, :out_feats]


# ---------------------------------------------------------------------------
# Glue: parameter init / packing, adjacency + pooling matrices (plain JAX)
# ---------------------------------------------------------------------------

def init_params(key, in_feats, hidden, out_feats, num_layers):
    params = {"convs": []}
    for i in range(num_layers):
        ch_in = in_feats if i == 0 else hidden
        key, k1 = jax.random.split(key)
        params["convs"].append({
            "w": jax.random.normal(k1, (ch_in, hidden), jnp.float32)
                 * (1.0 / jnp.sqrt(ch_in)),
            "bias": jnp.zeros((hidden,), jnp.float32),
        })
    key, k1, k2 = jax.random.split(key, 3)
    params["lin_w"] = jax.random.normal(k1, (hidden, out_feats), jnp.float32) \
                      * (1.0 / jnp.sqrt(hidden))
    params["lin_b"] = jax.random.normal(k2, (out_feats,), jnp.float32) * 0.01
    return params


def pack_params(params, in_feats, hidden, out_feats):
    """Zero-pad every feature dim to the 128-lane width and stack GCN layers.

    NOTE (MXU utilization): at HIDDEN=32 padded to 128 most MXU columns carry
    zero padding; if the model permits, hidden up to 128 (256 on v6e/v7x) is
    essentially free in kernel time."""
    d_pad = _round_up(max(in_feats, hidden), LANE)
    out_pad = _round_up(out_feats, LANE)
    num_layers = len(params["convs"])

    w_stack = jnp.zeros((num_layers, d_pad, d_pad), jnp.float32)
    b_stack = jnp.zeros((num_layers, 1, d_pad), jnp.float32)
    for l, layer in enumerate(params["convs"]):
        ci, co = layer["w"].shape
        w_stack = w_stack.at[l, :ci, :co].set(layer["w"])
        b_stack = b_stack.at[l, 0, :co].set(layer["bias"])

    lin_w = jnp.zeros((d_pad, out_pad), jnp.float32) \
        .at[:hidden, :out_feats].set(params["lin_w"])
    lin_b = jnp.zeros((1, out_pad), jnp.float32) \
        .at[0, :out_feats].set(params["lin_b"])

    return {"w_stack": w_stack.astype(jnp.bfloat16),   # bf16 MXU operands
            "b_stack": b_stack,                        # f32 (added post-accum)
            "lin_w": lin_w.astype(jnp.bfloat16),
            "lin_b": lin_b}


def build_normalized_adjacency_padded(edge_index, num_nodes, n_pad):
    """Dense D^{-1/2} (A + I) D^{-1/2}, built directly at padded shape, bf16.

    Matches PyG gcn_norm defaults: duplicate (non-self-loop) edges accumulate
    via scatter-add; the diagonal is a single unit self-loop; zero-degree rows
    get a zero normalizer (no NaNs). Padded rows/cols stay exactly zero."""
    src, dst = edge_index[0], edge_index[1]
    off_diag = (src != dst).astype(jnp.float32)
    adj = jnp.zeros((n_pad, n_pad), jnp.float32)
    adj = adj.at[dst, src].add(off_diag)
    idx = jnp.arange(num_nodes)
    adj = adj.at[idx, idx].set(1.0)                  # add_self_loops=True
    deg = jnp.sum(adj, axis=1)                       # in-degree incl. self-loop
    dinv = jnp.where(deg > 0, jax.lax.rsqrt(deg), 0.0)
    return (adj * dinv[:, None] * dinv[None, :]).astype(jnp.bfloat16)


def build_pool_matrix_padded(batch, num_graphs, g_pad, n_pad):
    """pool[g, i] = 1/|{i: batch[i]==g}| if batch[i]==g else 0 (mean pool)."""
    n = batch.shape[0]
    onehot = (batch[None, :] == jnp.arange(num_graphs)[:, None]).astype(jnp.float32)
    counts = jnp.maximum(jnp.sum(onehot, axis=1, keepdims=True), 1.0)
    pool = jnp.zeros((g_pad, n_pad), jnp.float32).at[:num_graphs, :n].set(onehot / counts)
    return pool.astype(jnp.bfloat16)


# ---------------------------------------------------------------------------
# Main
# ---------------------------------------------------------------------------

if __name__ == "__main__":
    # Small deterministic problem: 2 graphs of 8 nodes each.
    N, G = 16, 2
    IN_FEATS, HIDDEN, OUT_FEATS, NUM_LAYERS = 8, 32, 4, 2
    NUM_EDGES = 40

    key = jax.random.PRNGKey(0)
    key, kx, ke = jax.random.split(key, 3)

    x = jax.random.normal(kx, (N, IN_FEATS), jnp.float32)

    # Random directed edges, kept within each graph's node block.
    ke1, ke2 = jax.random.split(ke)
    src = jax.random.randint(ke1, (NUM_EDGES,), 0, N // G)
    dst = jax.random.randint(ke2, (NUM_EDGES,), 0, N // G)
    graph_of_edge = jnp.arange(NUM_EDGES) % G
    offset = graph_of_edge * (N // G)
    edge_index = jnp.stack([src + offset, dst + offset], axis=0)   # [2, E]

    batch = jnp.repeat(jnp.arange(G), N // G)                      # [N]

    params = init_params(key, IN_FEATS, HIDDEN, OUT_FEATS, NUM_LAYERS)
    packed = pack_params(params, IN_FEATS, HIDDEN, OUT_FEATS)

    d_pad = packed["w_stack"].shape[-1]
    n_pad = _round_up(N, LANE)
    g_pad = _round_up(max(G, 1), SUBLANE)

    x_pad = jnp.zeros((n_pad, d_pad), jnp.float32) \
        .at[:N, :IN_FEATS].set(x).astype(jnp.bfloat16)
    adj_pad = build_normalized_adjacency_padded(edge_index, N, n_pad)
    pool_pad = build_pool_matrix_padded(batch, G, g_pad, n_pad)

    out = gcn_forward(packed, x_pad, adj_pad, pool_pad, G, OUT_FEATS)
    out = jax.block_until_ready(out)

    assert out.shape == (G, OUT_FEATS), out.shape
    assert bool(jnp.all(jnp.isfinite(out)))
    print("KERNEL_OK")
</pallas_src>

<mosaic_0001>
module attributes {stable_mosaic.version = 11 : i64} {
  func.func @gcn_fused_kernel(%arg0: memref<128x128xbf16, #tpu.memory_space<any>>, %arg1: memref<128x128xbf16, #tpu.memory_space<vmem>>, %arg2: memref<2x128x128xbf16, #tpu.memory_space<vmem>>, %arg3: memref<2x1x128xf32, #tpu.memory_space<vmem>>, %arg4: memref<16x128xbf16, #tpu.memory_space<vmem>>, %arg5: memref<128x128xbf16, #tpu.memory_space<vmem>>, %arg6: memref<1x128xf32, #tpu.memory_space<vmem>>, %arg7: memref<16x128xf32, #tpu.memory_space<vmem>>, %arg8: memref<128x128xbf16, #tpu.memory_space<vmem>>, %arg9: memref<!tpu.dma_semaphore, #tpu.memory_space<semaphore_mem>>) attributes {dimension_semantics = [], scalar_prefetch = 0 : i64, scratch_operands = 2 : i64, tpu.core_type = #tpu.core_type<tc>} {
    tpu.enqueue_dma source(%arg0 : memref<128x128xbf16, #tpu.memory_space<any>>) target(%arg8 : memref<128x128xbf16, #tpu.memory_space<vmem>>) target_semaphore(%arg9 : memref<!tpu.dma_semaphore, #tpu.memory_space<semaphore_mem>>)
    %c0 = arith.constant 0 : index
    %c0_0 = arith.constant 0 : index
    %0 = vector.load %arg1[%c0, %c0_0] : memref<128x128xbf16, #tpu.memory_space<vmem>>, vector<128x128xbf16>
    %c0_1 = arith.constant 0 : index
    %c0_2 = arith.constant 0 : index
    %c0_3 = arith.constant 0 : index
    %1 = vector.load %arg2[%c0_1, %c0_2, %c0_3] : memref<2x128x128xbf16, #tpu.memory_space<vmem>>, vector<1x128x128xbf16>
    %2 = vector.shape_cast %1 : vector<1x128x128xbf16> to vector<128x128xbf16>
    %cst = arith.constant dense<0.000000e+00> : vector<128x128xf32>
    %3 = tpu.matmul %0, %2, %cst {dimension_numbers = #tpu.dot_dimension_numbers<[1], [0], [0], [1], [0, 0, 1, 1], [], []>} : vector<128x128xbf16>, vector<128x128xbf16>, vector<128x128xf32> -> vector<128x128xf32>
    tpu.wait_dma2 semaphore(%arg9 : memref<!tpu.dma_semaphore, #tpu.memory_space<semaphore_mem>>) src(%arg0 : memref<128x128xbf16, #tpu.memory_space<any>>) dst(%arg8 : memref<128x128xbf16, #tpu.memory_space<vmem>>)
    %c0_4 = arith.constant 0 : index
    %c0_5 = arith.constant 0 : index
    %4 = vector.load %arg8[%c0_4, %c0_5] : memref<128x128xbf16, #tpu.memory_space<vmem>>, vector<128x128xbf16>
    %5 = arith.truncf %3 : vector<128x128xf32> to vector<128x128xbf16>
    %cst_6 = arith.constant dense<0.000000e+00> : vector<128x128xf32>
    %6 = tpu.matmul %4, %5, %cst_6 {dimension_numbers = #tpu.dot_dimension_numbers<[1], [0], [0], [1], [0, 0, 1, 1], [], []>} : vector<128x128xbf16>, vector<128x128xbf16>, vector<128x128xf32> -> vector<128x128xf32>
    %c0_7 = arith.constant 0 : index
    %c0_8 = arith.constant 0 : index
    %c0_9 = arith.constant 0 : index
    %7 = vector.load %arg3[%c0_7, %c0_8, %c0_9] : memref<2x1x128xf32, #tpu.memory_space<vmem>>, vector<1x1x128xf32>
    %8 = vector.shape_cast %7 : vector<1x1x128xf32> to vector<1x128xf32>
    %9 = vector.broadcast %8 : vector<1x128xf32> to vector<128x128xf32>
    %10 = arith.addf %6, %9 : vector<128x128xf32>
    %cst_10 = arith.constant 0.000000e+00 : f32
    %11 = vector.broadcast %cst_10 : f32 to vector<128x128xf32>
    %12 = arith.maximumf %10, %11 : vector<128x128xf32>
    %13 = arith.truncf %12 : vector<128x128xf32> to vector<128x128xbf16>
    %c1 = arith.constant 1 : index
    %c0_11 = arith.constant 0 : index
    %c0_12 = arith.constant 0 : index
    %14 = vector.load %arg2[%c1, %c0_11, %c0_12] : memref<2x128x128xbf16, #tpu.memory_space<vmem>>, vector<1x128x128xbf16>
    %15 = vector.shape_cast %14 : vector<1x128x128xbf16> to vector<128x128xbf16>
    %cst_13 = arith.constant dense<0.000000e+00> : vector<128x128xf32>
    %16 = tpu.matmul %13, %15, %cst_13 {dimension_numbers = #tpu.dot_dimension_numbers<[1], [0], [0], [1], [0, 0, 1, 1], [], []>} : vector<128x128xbf16>, vector<128x128xbf16>, vector<128x128xf32> -> vector<128x128xf32>
    %17 = arith.truncf %16 : vector<128x128xf32> to vector<128x128xbf16>
    %cst_14 = arith.constant dense<0.000000e+00> : vector<128x128xf32>
    %18 = tpu.matmul %4, %17, %cst_14 {dimension_numbers = #tpu.dot_dimension_numbers<[1], [0], [0], [1], [0, 0, 1, 1], [], []>} : vector<128x128xbf16>, vector<128x128xbf16>, vector<128x128xf32> -> vector<128x128xf32>
    %c1_15 = arith.constant 1 : index
    %c0_16 = arith.constant 0 : index
    %c0_17 = arith.constant 0 : index
    %19 = vector.load %arg3[%c1_15, %c0_16, %c0_17] : memref<2x1x128xf32, #tpu.memory_space<vmem>>, vector<1x1x128xf32>
    %20 = vector.shape_cast %19 : vector<1x1x128xf32> to vector<1x128xf32>
    %21 = vector.broadcast %20 : vector<1x128xf32> to vector<128x128xf32>
    %22 = arith.addf %18, %21 : vector<128x128xf32>
    %cst_18 = arith.constant 0.000000e+00 : f32
    %23 = vector.broadcast %cst_18 : f32 to vector<128x128xf32>
    %24 = arith.maximumf %22, %23 : vector<128x128xf32>
    %25 = arith.truncf %24 : vector<128x128xf32> to vector<128x128xbf16>
    %c0_19 = arith.constant 0 : index
    %c0_20 = arith.constant 0 : index
    %26 = vector.load %arg4[%c0_19, %c0_20] : memref<16x128xbf16, #tpu.memory_space<vmem>>, vector<16x128xbf16>
    %cst_21 = arith.constant dense<0.000000e+00> : vector<16x128xf32>
    %27 = tpu.matmul %26, %25, %cst_21 {dimension_numbers = #tpu.dot_dimension_numbers<[1], [0], [0], [1], [0, 0, 1, 1], [], []>} : vector<16x128xbf16>, vector<128x128xbf16>, vector<16x128xf32> -> vector<16x128xf32>
    %28 = arith.truncf %27 : vector<16x128xf32> to vector<16x128xbf16>
    %c0_22 = arith.constant 0 : index
    %c0_23 = arith.constant 0 : index
    %29 = vector.load %arg5[%c0_22, %c0_23] : memref<128x128xbf16, #tpu.memory_space<vmem>>, vector<128x128xbf16>
    %cst_24 = arith.constant dense<0.000000e+00> : vector<16x128xf32>
    %30 = tpu.matmul %28, %29, %cst_24 {dimension_numbers = #tpu.dot_dimension_numbers<[1], [0], [0], [1], [0, 0, 1, 1], [], []>} : vector<16x128xbf16>, vector<128x128xbf16>, vector<16x128xf32> -> vector<16x128xf32>
    %c0_25 = arith.constant 0 : index
    %c0_26 = arith.constant 0 : index
    %31 = vector.load %arg6[%c0_25, %c0_26] : memref<1x128xf32, #tpu.memory_space<vmem>>, vector<1x128xf32>
    %32 = vector.broadcast %31 : vector<1x128xf32> to vector<16x128xf32>
    %33 = arith.addf %30, %32 : vector<16x128xf32>
    %c0_27 = arith.constant 0 : index
    %c0_28 = arith.constant 0 : index
    %34 = vector.load %arg7[%c0_27, %c0_28] : memref<16x128xf32, #tpu.memory_space<vmem>>, vector<16x128xf32>
    tpu.vector_store %arg7[%c0_27, %c0_28], %33 {strides = array<i32>} : memref<16x128xf32, #tpu.memory_space<vmem>>, vector<16x128xf32>,
    return
  }
}

</mosaic_0001>

<bundles_post_ra>
// kernel: tpu_custom_call.1
= control target key start
LH: loop header
LB: loop body
LE: loop exit
PB: predicated region body
PF: predicated region fallthrough
CT: control target
= control target key end

     0   :  { %12 = vsyncpa [#allocation5], 0  ;;  %s1573_s0 = inlined_call_operand.hbm [shape: bf16[128,128], index: 0, kind: input, shape index: {}]   ;;  %s1574_s1 = inlined_call_operand.hbm [shape: bf16[128,128], index: 1, kind: input, shape index: {}]   ;;  %s1575_s2 = inlined_call_operand.hbm [shape: bf16[2,128,128], index: 2, kind: input, shape index: {}]   ;;  %s1576_s3 = inlined_call_operand.vmem [shape: f32[2,1,128], index: 3, kind: input, shape index: {}]   ;;  %s1577_s4 = inlined_call_operand.vmem [shape: bf16[16,128], index: 4, kind: input, shape index: {}]   ;;  %s1578_s5 = inlined_call_operand.hbm [shape: bf16[128,128], index: 5, kind: input, shape index: {}]   ;;  %s1579_s6 = inlined_call_operand.vmem [shape: f32[1,128], index: 6, kind: input, shape index: {}]   ;;  %s1580_s7 = inlined_call_operand.hbm [shape: f32[16,128], index: 7, kind: output, shape index: {}]  }
   0x1   :  { %13 = vsyncpa [#allocation8], 0 }
   0x2   :  { %14 = vsyncpa [#allocation6], 0  ;;  %s1388_s24 = smov [#allocation7]   ;;  %s1389_s26 = smov [#allocation4]  }
   0x3   :  { %s32_s25 = sshll.u32 %s1388_s24, 4  ;;  %s20_s27 = sshll.u32 %s1389_s26, 4  ;;  %s33_s25 = int_to_ptr.vmem [resolvable:$true] %s32_s25  ;;  %s1439_s27 = int_to_ptr.vmem [resolvable:$true] %s20_s27 }
   0x4   :  { %s1270_s30 = scalar_lea.hbm %s1575_s2, 2048 }
   0x5   :  { %p1271_p0 = scmp.ne.s32.totalorder %s1575_s2, %s1270_s30  ;;  %p1274_p1 = scmp.lt.u32.totalorder %s1270_s30, %s1575_s2 }
   0x7   :  { %p1276_p2 = pnand %p1274_p1, %p1271_p0 }
   0x9   :  { %1279 = shalt.err (!%p1276_p2)
}
   0xa   :  { %s1280_s12 = scalar_lea.vmem %s33_s25, 2048  ;;  %p1285_p4 = scmp.lt.s32.totalorder %s33_s25, %s33_s25 }
   0xb   :  { %p1281_p3 = scmp.ne.s32.totalorder %s33_s25, %s1280_s12  ;;  %p1286_p5 = scmp.lt.s32.totalorder %s1280_s12, %s1280_s12 }
   0xd   :  { %p1287_p6 = por %p1286_p5, %p1285_p4 }
   0xf   :  { %p1288_p7 = pnand %p1287_p6, %p1281_p3 }
  0x11   :  { %1291 = shalt.err (!%p1288_p7)
}
  0x12   :  { %s1390_s13 = smov 64   ;;  %s1391_s14 = smov 4  }
  0x13   :  { %38 = dma.hbm_to_vmem [thread:$0]  %s1575_s2, 2048, %s33_s25, [#allocation8], %s1390_s13, %s1390_s13, %s1391_s14  }
  0x14   :  { %s1292_s19 = scalar_lea.hbm %s1574_s1, 1024 }
  0x15   :  { %p1293_p8 = scmp.ne.s32.totalorder %s1574_s1, %s1292_s19  ;;  %p1296_p9 = scmp.lt.u32.totalorder %s1292_s19, %s1574_s1 }
  0x17   :  { %p1298_p10 = pnand %p1296_p9, %p1293_p8 }
  0x19   :  { %1301 = shalt.err (!%p1298_p10)
}
  0x1a   :  { %s1302_s24 = scalar_lea.vmem %s1439_s27, 1024  ;;  %p1307_p12 = scmp.lt.s32.totalorder %s1439_s27, %s1439_s27 }
  0x1b   :  { %p1303_p11 = scmp.ne.s32.totalorder %s1439_s27, %s1302_s24  ;;  %p1308_p13 = scmp.lt.s32.totalorder %s1302_s24, %s1302_s24 }
  0x1d   :  { %p1309_p0 = por %p1308_p13, %p1307_p12 }
  0x1f   :  { %p1310_p1 = pnand %p1309_p0, %p1303_p11 }
  0x21   :  { %1313 = shalt.err (!%p1310_p1)
}
  0x22   :  { %26 = dma.hbm_to_vmem [thread:$0]  %s1574_s1, 1024, %s1439_s27, [#allocation5], %s1390_s13, %s1390_s13, %s1391_s14  }
  0x23   :  { %s1392_s26 = smov [#allocation9]   ;;  %s1314_s8 = scalar_lea.hbm %s1578_s5, 1024 }
  0x24   :  { %s48_s28 = sshll.u32 %s1392_s26, 4  ;;  %p1315_p2 = scmp.ne.s32.totalorder %s1578_s5, %s1314_s8  ;;  %s49_s28 = int_to_ptr.vmem [resolvable:$true] %s48_s28 }
  0x25   :  { %p1318_p3 = scmp.lt.u32.totalorder %s1314_s8, %s1578_s5 }
  0x27   :  { %p1320_p4 = pnand %p1318_p3, %p1315_p2 }
  0x29   :  { %1323 = shalt.err (!%p1320_p4)
}
  0x2a   :  { %s1324_s15 = scalar_lea.vmem %s49_s28, 1024  ;;  %p1329_p6 = scmp.lt.s32.totalorder %s49_s28, %s49_s28 }
  0x2b   :  { %p1325_p5 = scmp.ne.s32.totalorder %s49_s28, %s1324_s15  ;;  %p1330_p7 = scmp.lt.s32.totalorder %s1324_s15, %s1324_s15 }
  0x2d   :  { %p1331_p8 = por %p1330_p7, %p1329_p6 }
  0x2f   :  { %p1332_p9 = pnand %p1331_p8, %p1325_p5 }
  0x31   :  { %1335 = shalt.err (!%p1332_p9)
}
  0x32   :  { %54 = dma.hbm_to_vmem [thread:$0]  %s1578_s5, 1024, %s49_s28, [#allocation8], %s1390_s13, %s1390_s13, %s1391_s14  }
  0x33   :  { %1380 = dma.done.wait [#allocation5], 1024  }
  0x34   :  { %1381 = vsyncadd [#allocation5], 4294966272 }
  0x35   :  { %1382 = dma.done.wait [#allocation8], 3072  }
  0x36   :  { %1383 = vsyncadd [#allocation8], 4294964224  ;;  %v1237_v0 = vld [vmem:[#allocation7] sm:$0xff]   ;;  %v1238_v1 = vld [vmem:[#allocation7 + $0x8] sm:$0xff]   ;;  %s1393_s5 = smov [#allocation2]   ;;  %s1336_s17 = scalar_lea.hbm %s1573_s0, 1024 }
  0x37   :  { %1058 = vmatprep.subr.bf16.mxu0 %v1237_v0  ;;  %v1239_v2 = vld [vmem:[#allocation7 + $0x10] sm:$0xff]   ;;  %v1240_v3 = vld [vmem:[#allocation7 + $0x18] sm:$0xff]   ;;  %v1245_v4 = vld [vmem:[#allocation4] sm:$0xff]   ;;  %s74_s13 = sshll.u32 %s1393_s5, 4  ;;  %p1337_p10 = scmp.ne.s32.totalorder %s1573_s0, %s1336_s17  ;;  %s75_s13 = int_to_ptr.vmem [resolvable:$true] %s74_s13 }
  0x38   :  { %1059 = vmatpush3.bf16.msra.mxu0 %v1237_v0  ;;  %1074 = vmatprep.mubr.bf16.mxu0 %v1245_v4  ;;  %v1241_v5 = vld [vmem:[#allocation7 + $0x20] sm:$0xff]   ;;  %v1242_v6 = vld [vmem:[#allocation7 + $0x28] sm:$0xff]   ;;  %v1243_v7 = vld [vmem:[#allocation7 + $0x30] sm:$0xff]   ;;  %p1340_p11 = scmp.lt.u32.totalorder %s1336_s17, %s1573_s0 }
  0x39   :  { %1060 = vmatprep.subr.bf16.mxu0 %v1238_v1  ;;  %v1244_v8 = vld [vmem:[#allocation7 + $0x38] sm:$0xff]   ;;  %v1246_v9 = vld [vmem:[#allocation4 + $0x8] sm:$0xff]   ;;  %v1247_v10 = vld [vmem:[#allocation4 + $0x10] sm:$0xff]  }
  0x3a   :  { %v1248_v11 = vld [vmem:[#allocation4 + $0x18] sm:$0xff]   ;;  %v1249_v12 = vld [vmem:[#allocation4 + $0x20] sm:$0xff]   ;;  %v1250_v13 = vld [vmem:[#allocation4 + $0x28] sm:$0xff]   ;;  %p1342_p12 = pnand %p1340_p11, %p1337_p10 }
  0x3b   :  { %v1251_v14 = vld [vmem:[#allocation4 + $0x30] sm:$0xff]   ;;  %v1252_v15 = vld [vmem:[#allocation4 + $0x38] sm:$0xff]  }
  0x3c   :  { %1061 = vmatpush3.bf16.msra.mxu0 %v1238_v1 }
  0x3d   :  { %1062 = vmatprep.subr.bf16.mxu0 %v1239_v2 }
  0x40   :  { %1063 = vmatpush3.bf16.msra.mxu0 %v1239_v2 }
  0x41   :  { %1064 = vmatprep.subr.bf16.mxu0 %v1240_v3 }
  0x44   :  { %1065 = vmatpush3.bf16.msra.mxu0 %v1240_v3 }
  0x45   :  { %1066 = vmatprep.subr.bf16.mxu0 %v1241_v5 }
  0x48   :  { %1067 = vmatpush3.bf16.msra.mxu0 %v1241_v5 }
  0x49   :  { %1068 = vmatprep.subr.bf16.mxu0 %v1242_v6 }
  0x4c   :  { %1069 = vmatpush3.bf16.msra.mxu0 %v1242_v6 }
  0x4d   :  { %1070 = vmatprep.subr.bf16.mxu0 %v1243_v7 }
  0x50   :  { %1071 = vmatpush3.bf16.msra.mxu0 %v1243_v7 }
  0x51   :  { %1072 = vmatprep.subr.bf16.mxu0 %v1244_v8 }
  0x54   :  { %1073 = vmatpush3.bf16.msra.mxu0 %v1244_v8 }
  0x57   :  { %1075 = vmatmul.mubr.bf16.vlgmr.msra.gmra.mrb[0].mxu0 %v1246_v9 }
  0x58   :  { %1078 = vmatprep.mubr.bf16.mxu0 %v1247_v10 }
  0x5f   :  { %1079 = vmatmul.mubr.bf16.gmra.mrb[4].mxu0 %v1248_v11 }
  0x60   :  { %1082 = vmatprep.mubr.bf16.mxu0 %v1249_v12 }
  0x67   :  { %1083 = vmatmul.mubr.bf16.gmra.mrb[8].mxu0 %v1250_v13 }
  0x68   :  { %1086 = vmatprep.mubr.bf16.mxu0 %v1251_v14 }
  0x6f   :  { %1087 = vmatmul.mubr.bf16.gmra.mrb[12].mxu0 %v1252_v15 }
  0x70   :  { %1345 = shalt.err (!%p1342_p12)  }
  0x71   :  { %s1346_s22 = scalar_lea.vmem %s75_s13, 1024  ;;  %p1351_p0 = scmp.lt.s32.totalorder %s75_s13, %s75_s13 }
  0x72   :  { %p1347_p13 = scmp.ne.s32.totalorder %s75_s13, %s1346_s22  ;;  %p1352_p1 = scmp.lt.s32.totalorder %s1346_s22, %s1346_s22 }
  0x74   :  { %p1353_p2 = por %p1352_p1, %p1351_p0 }
  0x76   :  { %p1354_p3 = pnand %p1353_p2, %p1347_p13 }
  0x78   :  { %1357 = shalt.err (!%p1354_p3)  }
  0x79   :  { %77 = dma.hbm_to_vmem [thread:$0]  %s1573_s0, 1024, %s75_s13, [#allocation3] }
 0x12a   :  { %v1076_v16 = vpop.f32.mrb[0].mxu0 }
 0x12b   :  { %v240_v17 = vpop.f32.mrb[1].mxu0 }
 0x12c   :  { %v1077_v18 = vpop.f32.mrb[2].mxu0 }
 0x12d   :  { %v243_v19 = vpop.f32.mrb[3].mxu0  ;;  %v316_v33 = vpack.c.bf16 %v1077_v18, %v1076_v16 }
 0x12e   :  { %v315_v32 = vpack.c.bf16 %v243_v19, %v240_v17 }
 0x132   :  { %v1080_v20 = vpop.f32.mrb[4].mxu0 }
 0x133   :  { %v256_v21 = vpop.f32.mrb[5].mxu0 }
 0x134   :  { %v1081_v22 = vpop.f32.mrb[6].mxu0 }
 0x135   :  { %v259_v23 = vpop.f32.mrb[7].mxu0 }
 0x13a   :  { %v1084_v24 = vpop.f32.mrb[8].mxu0 }
 0x13b   :  { %v272_v25 = vpop.f32.mrb[9].mxu0 }
 0x13c   :  { %v1085_v26 = vpop.f32.mrb[10].mxu0 }
 0x13d   :  { %v275_v27 = vpop.f32.mrb[11].mxu0 }
 0x142   :  { %v1088_v28 = vpop.f32.mrb[12].mxu0 }
 0x143   :  { %v288_v29 = vpop.f32.mrb[13].mxu0 }
 0x144   :  { %v1089_v30 = vpop.f32.mrb[14].mxu0 }
 0x145   :  { %v291_v31 = vpop.f32.mrb[15].mxu0 }
 0x146   :  { %1384 = dma.done.wait [#allocation3], 1024 }
 0x147   :  { %1385 = vsyncadd [#allocation3], 4294966272  ;;  %1090 = vmatprep.subr.bf16.mxu1 %v315_v32  ;;  %v317_v34 = vpack.c.bf16 %v259_v23, %v256_v21  ;;  %v307_v35 = vld [vmem:[#allocation2] sm:$0xff]  ;;  %v318_v36 = vpack.c.bf16 %v1081_v22, %v1080_v20  ;;  %v1254_v38 = vld [vmem:[#allocation7 + $0x48] sm:$0xff]   ;;  %v319_v39 = vpack.c.bf16 %v275_v27, %v272_v25  ;;  %v320_v41 = vpack.c.bf16 %v1085_v26, %v1084_v24  ;;  %s1396_s8 = smov [#allocation10]  }
 0x148   :  { %1091 = vmatpush3.bf16.msra.mxu1 %v315_v32  ;;  %1106 = vmatprep.mubr.bf16.mxu1 %v307_v35  ;;  %v1253_v37 = vld [vmem:[#allocation7 + $0x40] sm:$0xff]   ;;  %v1255_v40 = vld [vmem:[#allocation7 + $0x50] sm:$0xff]   ;;  %v1256_v42 = vld [vmem:[#allocation7 + $0x58] sm:$0xff]   ;;  %v321_v43 = vpack.c.bf16 %v291_v31, %v288_v29  ;;  %v322_v45 = vpack.c.bf16 %v1089_v30, %v1088_v28  ;;  %vm1395_vm0 = vmmov 0   ;;  %s919_s9 = sshll.u32 %s1396_s8, 4  ;;  %s920_s9 = int_to_ptr.vmem [resolvable:$true] %s919_s9 }
 0x149   :  { %1092 = vmatprep.subr.bf16.mxu1 %v316_v33  ;;  %1122 = vmatprep.subr.bf16.mxu0 %v1253_v37  ;;  %v1257_v44 = vld [vmem:[#allocation7 + $0x60] sm:$0xff]   ;;  %v1258_v46 = vld [vmem:[#allocation7 + $0x68] sm:$0xff]   ;;  %v1505_v48 = vld [vmem:[#allocation2 + $0x10] sm:$0xff]  ;;  %p1363_p5 = scmp.lt.s32.totalorder %s920_s9, %s920_s9 }
 0x14a   :  { %1123 = vmatpush3.bf16.msra.mxu0 %v1253_v37  ;;  %v1503_v47 = vld [vmem:[#allocation2 + $0x8] sm:$0xff]  ;;  %v1509_v49 = vld [vmem:[#allocation2 + $0x18] sm:$0xff]  ;;  %v1511_v50 = vld [vmem:[#allocation2 + $0x20] sm:$0xff] }
 0x14b   :  { %1124 = vmatprep.subr.bf16.mxu0 %v1254_v38  ;;  %v1515_v51 = vld [vmem:[#allocation2 + $0x28] sm:$0xff]  ;;  %v1517_v52 = vld [vmem:[#allocation2 + $0x30] sm:$0xff]  ;;  %v1521_v53 = vld [vmem:[#allocation2 + $0x38] sm:$0xff] }
 0x14c   :  { %1093 = vmatpush3.bf16.msra.mxu1 %v316_v33  ;;  %v1259_v54 = vld [vmem:[#allocation7 + $0x70] sm:$0xff]   ;;  %v1260_v55 = vld [vmem:[#allocation7 + $0x78] sm:$0xff]   ;;  %v954_v56 = vld [vmem:[%s1576_s3] ss:$0 sm:$0xff] }
 0x14d   :  { %1094 = vmatprep.subr.bf16.mxu1 %v317_v34 }
 0x14e   :  { %1125 = vmatpush3.bf16.msra.mxu0 %v1254_v38 }
 0x14f   :  { %1126 = vmatprep.subr.bf16.mxu0 %v1255_v40 }
 0x150   :  { %1095 = vmatpush3.bf16.msra.mxu1 %v317_v34 }
 0x151   :  { %1096 = vmatprep.subr.bf16.mxu1 %v318_v36 }
 0x152   :  { %1127 = vmatpush3.bf16.msra.mxu0 %v1255_v40 }
 0x153   :  { %1128 = vmatprep.subr.bf16.mxu0 %v1256_v42 }
 0x154   :  { %1097 = vmatpush3.bf16.msra.mxu1 %v318_v36 }
 0x155   :  { %1098 = vmatprep.subr.bf16.mxu1 %v319_v39 }
 0x156   :  { %1129 = vmatpush3.bf16.msra.mxu0 %v1256_v42 }
 0x157   :  { %1130 = vmatprep.subr.bf16.mxu0 %v1257_v44 }
 0x158   :  { %1099 = vmatpush3.bf16.msra.mxu1 %v319_v39 }
 0x159   :  { %1100 = vmatprep.subr.bf16.mxu1 %v320_v41 }
 0x15a   :  { %1131 = vmatpush3.bf16.msra.mxu0 %v1257_v44 }
 0x15b   :  { %1132 = vmatprep.subr.bf16.mxu0 %v1258_v46 }
 0x15c   :  { %1101 = vmatpush3.bf16.msra.mxu1 %v320_v41 }
 0x15d   :  { %1102 = vmatprep.subr.bf16.mxu1 %v321_v43 }
 0x15e   :  { %1133 = vmatpush3.bf16.msra.mxu0 %v1258_v46 }
 0x15f   :  { %1134 = vmatprep.subr.bf16.mxu0 %v1259_v54 }
 0x160   :  { %1103 = vmatpush3.bf16.msra.mxu1 %v321_v43 }
 0x161   :  { %1104 = vmatprep.subr.bf16.mxu1 %v322_v45 }
 0x162   :  { %1135 = vmatpush3.bf16.msra.mxu0 %v1259_v54 }
 0x163   :  { %1136 = vmatprep.subr.bf16.mxu0 %v1260_v55 }
 0x164   :  { %1105 = vmatpush3.bf16.msra.mxu1 %v322_v45 }
 0x166   :  { %1137 = vmatpush3.bf16.msra.mxu0 %v1260_v55 }
 0x167   :  { %1107 = vmatmul.mubr.bf16.vlgmr.msra.gmra.mrb[0].mxu1 %v1503_v47 }
 0x168   :  { %1110 = vmatprep.mubr.bf16.mxu1 %v1505_v48 }
 0x16f   :  { %1111 = vmatmul.mubr.bf16.gmra.mrb[4].mxu1 %v1509_v49 }
 0x170   :  { %1114 = vmatprep.mubr.bf16.mxu1 %v1511_v50 }
 0x177   :  { %1115 = vmatmul.mubr.bf16.gmra.mrb[8].mxu1 %v1515_v51 }
 0x178   :  { %1118 = vmatprep.mubr.bf16.mxu1 %v1517_v52 }
 0x17f   :  { %1119 = vmatmul.mubr.bf16.gmra.mrb[12].mxu1 %v1521_v53 }
 0x180   :  { %1170 = vmatprep.mubr.bf16.mxu1 %v307_v35 }
 0x23a   :  { %v1108_v57 = vpop.f32.mrb[0].mxu1 }
 0x23b   :  { %v373_v58 = vadd.f32 %v1108_v57, %v954_v56  ;;  %v364_v59 = vpop.f32.mrb[1].mxu1 }
 0x23c   :  { %v365_v60 = vadd.f32 %v954_v56, %v364_v59  ;;  %v1109_v61 = vpop.f32.mrb[2].mxu1 }
 0x23d   :  { %v376_v62 = vadd.f32 %v1109_v61, %v954_v56  ;;  %v367_v63 = vpop.f32.mrb[3].mxu1  ;;  %v429_v1 = vmax.f32 %v373_v58, 0.0 }
 0x23e   :  { %v368_v0 = vadd.f32 %v954_v56, %v367_v63  ;;  %v427_v3 = vmax.f32 %v365_v60, 0.0 }
 0x23f   :  { %v430_v2 = vmax.f32 %v376_v62, 0.0 }
 0x240   :  { %v428_v4 = vmax.f32 %v368_v0, 0.0 }
 0x241   :  { %v444_v5 = vpack.c.bf16 %v430_v2, %v429_v1 }
 0x242   :  { %v1112_v6 = vpop.f32.mrb[4].mxu1  ;;  %v443_v7 = vpack.c.bf16 %v428_v4, %v427_v3 }
 0x243   :  { %v389_v8 = vadd.f32 %v1112_v6, %v954_v56  ;;  %v380_v9 = vpop.f32.mrb[5].mxu1 }
 0x244   :  { %v381_v10 = vadd.f32 %v954_v56, %v380_v9  ;;  %v1113_v11 = vpop.f32.mrb[6].mxu1  ;;  %1138 = vmatprep.mubr.bf16.mxu0 %v443_v7 }
 0x245   :  { %v392_v12 = vadd.f32 %v1113_v11, %v954_v56  ;;  %v383_v13 = vpop.f32.mrb[7].mxu1  ;;  %1139 = vmatmul.mubr.bf16.vlgmr.msra.gmra.mrb[16].mxu0 %v444_v5  ;;  %v433_v15 = vmax.f32 %v389_v8, 0.0 }
 0x246   :  { %v384_v14 = vadd.f32 %v954_v56, %v383_v13  ;;  %v431_v17 = vmax.f32 %v381_v10, 0.0 }
 0x247   :  { %v434_v16 = vmax.f32 %v392_v12, 0.0 }
 0x248   :  { %v432_v18 = vmax.f32 %v384_v14, 0.0 }
 0x249   :  { %v446_v19 = vpack.c.bf16 %v434_v16, %v433_v15  ;;  %v1394_v16 = vmov 0.0  }
 0x24a   :  { %v445_v20 = vpack.c.bf16 %v432_v18, %v431_v17  ;;  %v1116_v21 = vpop.f32.mrb[8].mxu1  ;;  %1186 = vmatprep.subr.bf16.mxu0 %v1394_v16  ;;  %v964_v17 = vld [vmem:[%s1576_s3 + $0x1] ss:$0 sm:$0xff] }
 0x24b   :  { %v405_v22 = vadd.f32 %v1116_v21, %v954_v56  ;;  %v396_v23 = vpop.f32.mrb[9].mxu1 }
 0x24c   :  { %v397_v24 = vadd.f32 %v954_v56, %v396_v23  ;;  %v1117_v25 = vpop.f32.mrb[10].mxu1  ;;  %1142 = vmatprep.mubr.bf16.mxu0 %v445_v20 }
 0x24d   :  { %v408_v26 = vadd.f32 %v1117_v25, %v954_v56  ;;  %v399_v27 = vpop.f32.mrb[11].mxu1  ;;  %1143 = vmatmul.mubr.bf16.gmra.mrb[20].mxu0 %v446_v19  ;;  %v437_v29 = vmax.f32 %v405_v22, 0.0 }
 0x24e   :  { %v400_v28 = vadd.f32 %v954_v56, %v399_v27  ;;  %v435_v31 = vmax.f32 %v397_v24, 0.0 }
 0x24f   :  { %v438_v30 = vmax.f32 %v408_v26, 0.0 }
 0x250   :  { %v436_v32 = vmax.f32 %v400_v28, 0.0 }
 0x251   :  { %v448_v33 = vpack.c.bf16 %v438_v30, %v437_v29 }
 0x252   :  { %v447_v34 = vpack.c.bf16 %v436_v32, %v435_v31  ;;  %v1120_v35 = vpop.f32.mrb[12].mxu1 }
 0x253   :  { %v421_v36 = vadd.f32 %v1120_v35, %v954_v56  ;;  %v412_v37 = vpop.f32.mrb[13].mxu1 }
 0x254   :  { %v413_v38 = vadd.f32 %v954_v56, %v412_v37  ;;  %v1121_v39 = vpop.f32.mrb[14].mxu1  ;;  %1146 = vmatprep.mubr.bf16.mxu0 %v447_v34 }
 0x255   :  { %v424_v40 = vadd.f32 %v1121_v39, %v954_v56  ;;  %v415_v41 = vpop.f32.mrb[15].mxu1  ;;  %1147 = vmatmul.mubr.bf16.gmra.mrb[24].mxu0 %v448_v33  ;;  %v441_v43 = vmax.f32 %v421_v36, 0.0 }
 0x256   :  { %v416_v42 = vadd.f32 %v954_v56, %v415_v41  ;;  %v439_v45 = vmax.f32 %v413_v38, 0.0 }
 0x257   :  { %v442_v44 = vmax.f32 %v424_v40, 0.0 }
 0x258   :  { %v440_v46 = vmax.f32 %v416_v42, 0.0 }
 0x259   :  { %v450_v54 = vpack.c.bf16 %v442_v44, %v441_v43 }
 0x25a   :  { %v449_v55 = vpack.c.bf16 %v440_v46, %v439_v45 }
 0x25c   :  { %1150 = vmatprep.mubr.bf16.mxu0 %v449_v55 }
 0x25d   :  { %1151 = vmatmul.mubr.bf16.gmra.mrb[28].mxu0 %v450_v54 }
 0x25e   :  { %1202 = vmatprep.mubr.msk.bf16.mxu0 %vm1395_vm0, %v1394_v16 }
 0x318   :  { %v1140_v57 = vpop.f32.mrb[16].mxu0 }
 0x319   :  { %v550_v58 = vpop.f32.mrb[17].mxu0 }
 0x31a   :  { %v1141_v59 = vpop.f32.mrb[18].mxu0 }
 0x31b   :  { %v614_v60 = vpack.c.bf16 %v1141_v59, %v1140_v57  ;;  %v553_v61 = vpop.f32.mrb[19].mxu0 }
 0x31c   :  { %v613_v62 = vpack.c.bf16 %v553_v61, %v550_v58 }
 0x31e   :  { %1154 = vmatprep.subr.bf16.mxu1 %v613_v62 }
 0x31f   :  { %1155 = vmatpush3.bf16.msra.mxu1 %v613_v62 }
 0x320   :  { %v1144_v63 = vpop.f32.mrb[20].mxu0  ;;  %1156 = vmatprep.subr.bf16.mxu1 %v614_v60 }
 0x321   :  { %v566_v0 = vpop.f32.mrb[21].mxu0 }
 0x322   :  { %v1145_v56 = vpop.f32.mrb[22].mxu0 }
 0x323   :  { %v616_v1 = vpack.c.bf16 %v1145_v56, %v1144_v63  ;;  %v569_v2 = vpop.f32.mrb[23].mxu0  ;;  %1157 = vmatpush3.bf16.msra.mxu1 %v614_v60 }
 0x324   :  { %v615_v3 = vpack.c.bf16 %v569_v2, %v566_v0 }
 0x326   :  { %1158 = vmatprep.subr.bf16.mxu1 %v615_v3 }
 0x327   :  { %1159 = vmatpush3.bf16.msra.mxu1 %v615_v3 }
 0x328   :  { %v1148_v4 = vpop.f32.mrb[24].mxu0  ;;  %1160 = vmatprep.subr.bf16.mxu1 %v616_v1 }
 0x329   :  { %v582_v5 = vpop.f32.mrb[25].mxu0 }
 0x32a   :  { %v1149_v6 = vpop.f32.mrb[26].mxu0 }
 0x32b   :  { %v618_v7 = vpack.c.bf16 %v1149_v6, %v1148_v4  ;;  %v585_v8 = vpop.f32.mrb[27].mxu0  ;;  %1161 = vmatpush3.bf16.msra.mxu1 %v616_v1 }
 0x32c   :  { %v617_v9 = vpack.c.bf16 %v585_v8, %v582_v5 }
 0x32e   :  { %1162 = vmatprep.subr.bf16.mxu1 %v617_v9 }
 0x32f   :  { %1163 = vmatpush3.bf16.msra.mxu1 %v617_v9 }
 0x330   :  { %v1152_v10 = vpop.f32.mrb[28].mxu0  ;;  %1164 = vmatprep.subr.bf16.mxu1 %v618_v7 }
 0x331   :  { %v598_v11 = vpop.f32.mrb[29].mxu0 }
 0x332   :  { %v1153_v12 = vpop.f32.mrb[30].mxu0 }
 0x333   :  { %v620_v13 = vpack.c.bf16 %v1153_v12, %v1152_v10  ;;  %v601_v14 = vpop.f32.mrb[31].mxu0  ;;  %1165 = vmatpush3.bf16.msra.mxu1 %v618_v7 }
 0x334   :  { %v619_v15 = vpack.c.bf16 %v601_v14, %v598_v11 }
 0x336   :  { %1166 = vmatprep.subr.bf16.mxu1 %v619_v15 }
 0x337   :  { %1167 = vmatpush3.bf16.msra.mxu1 %v619_v15 }
 0x338   :  { %1168 = vmatprep.subr.bf16.mxu1 %v620_v13 }
 0x33b   :  { %1169 = vmatpush3.bf16.msra.mxu1 %v620_v13 }
 0x33c   :  { %1206 = vmatprep.subr.bf16.mxu1 %v1394_v16 }
 0x33e   :  { %1171 = vmatmul.mubr.bf16.vlgmr.msra.gmra.mrb[16].mxu1 %v1503_v47  ;;  %v1262_v47 = vld [vmem:[#allocation9] sm:$0xff]  }
 0x33f   :  { %1174 = vmatprep.mubr.bf16.mxu1 %v1505_v48  ;;  %1207 = vmatpush3.bf16.msra.mxu1 %v1262_v47  ;;  %v1263_v48 = vld [vmem:[#allocation9 + $0x8] sm:$0xff]  }
 0x340   :  { %1208 = vmatprep.subr.bf16.mxu1 %v1394_v16 }
 0x343   :  { %1209 = vmatpush3.bf16.msra.mxu1 %v1263_v48  ;;  %v1261_v48 = vld [vmem:[%s1577_s4] sm:$0xff]   ;;  %s1358_s4 = scalar_lea.vmem %s920_s9, 256 }
 0x344   :  { %1210 = vmatprep.subr.bf16.mxu1 %v1394_v16  ;;  %p1359_p4 = scmp.ne.s32.totalorder %s920_s9, %s1358_s4  ;;  %p1364_p6 = scmp.lt.s32.totalorder %s1358_s4, %s1358_s4 }
 0x346   :  { %1175 = vmatmul.mubr.bf16.gmra.mrb[20].mxu1 %v1509_v49  ;;  %v1264_v49 = vld [vmem:[#allocation9 + $0x10] sm:$0xff]   ;;  %p1365_p7 = por %p1364_p6, %p1363_p5 }
 0x347   :  { %1178 = vmatprep.mubr.bf16.mxu1 %v1511_v50  ;;  %1211 = vmatpush3.bf16.msra.mxu1 %v1264_v49  ;;  %v1265_v50 = vld [vmem:[#allocation9 + $0x18] sm:$0xff]  }
 0x348   :  { %1212 = vmatprep.subr.bf16.mxu1 %v1394_v16  ;;  %v1269_v49 = vld [vmem:[#allocation9 + $0x38] sm:$0xff]   ;;  %p1366_p8 = pnand %p1365_p7, %p1359_p4 }
 0x34b   :  { %1213 = vmatpush3.bf16.msra.mxu1 %v1265_v50 }
 0x34c   :  { %1214 = vmatprep.subr.bf16.mxu1 %v1394_v16 }
 0x34e   :  { %1179 = vmatmul.mubr.bf16.gmra.mrb[24].mxu1 %v1515_v51  ;;  %v1266_v51 = vld [vmem:[#allocation9 + $0x20] sm:$0xff]  }
 0x34f   :  { %1182 = vmatprep.mubr.bf16.mxu1 %v1517_v52  ;;  %1215 = vmatpush3.bf16.msra.mxu1 %v1266_v51  ;;  %v1267_v52 = vld [vmem:[#allocation9 + $0x28] sm:$0xff]  }
 0x350   :  { %1216 = vmatprep.subr.bf16.mxu1 %v1394_v16 }
 0x353   :  { %1217 = vmatpush3.bf16.msra.mxu1 %v1267_v52 }
 0x354   :  { %1218 = vmatprep.subr.bf16.mxu1 %v1394_v16 }
 0x356   :  { %1183 = vmatmul.mubr.bf16.gmra.mrb[28].mxu1 %v1521_v53  ;;  %v1268_v53 = vld [vmem:[#allocation9 + $0x30] sm:$0xff]  }
 0x357   :  { %1222 = vmatprep.mubr.msk.bf16.mxu1 %vm1395_vm0, %v1394_v16  ;;  %1219 = vmatpush3.bf16.msra.mxu1 %v1268_v53 }
 0x358   :  { %1220 = vmatprep.subr.bf16.mxu1 %v1394_v16 }
 0x35b   :  { %1221 = vmatpush3.bf16.msra.mxu1 %v1269_v49 }
 0x411   :  { %v1172_v18 = vpop.f32.mrb[16].mxu1 }
 0x412   :  { %v672_v19 = vadd.f32 %v1172_v18, %v964_v17  ;;  %v663_v20 = vpop.f32.mrb[17].mxu1  ;;  %v966_v18 = vld [vmem:[%s1579_s6] ss:$0 sm:$0xff] }
 0x413   :  { %v664_v21 = vadd.f32 %v964_v17, %v663_v20  ;;  %v1173_v22 = vpop.f32.mrb[18].mxu1 }
 0x414   :  { %v675_v23 = vadd.f32 %v1173_v22, %v964_v17  ;;  %v666_v24 = vpop.f32.mrb[19].mxu1  ;;  %v728_v26 = vmax.f32 %v672_v19, 0.0 }
 0x415   :  { %v667_v25 = vadd.f32 %v964_v17, %v666_v24  ;;  %v726_v28 = vmax.f32 %v664_v21, 0.0 }
 0x416   :  { %v729_v27 = vmax.f32 %v675_v23, 0.0 }
 0x417   :  { %v727_v29 = vmax.f32 %v667_v25, 0.0 }
 0x418   :  { %v743_v30 = vpack.c.bf16 %v729_v27, %v728_v26 }
 0x419   :  { %v742_v31 = vpack.c.bf16 %v727_v29, %v726_v28  ;;  %v1176_v32 = vpop.f32.mrb[20].mxu1 }
 0x41a   :  { %v688_v33 = vadd.f32 %v1176_v32, %v964_v17  ;;  %v679_v34 = vpop.f32.mrb[21].mxu1 }
 0x41b   :  { %v680_v35 = vadd.f32 %v964_v17, %v679_v34  ;;  %v1177_v36 = vpop.f32.mrb[22].mxu1  ;;  %1187 = vmatpush3.bf16.msra.mxu0 %v742_v31 }
 0x41c   :  { %v691_v37 = vadd.f32 %v1177_v36, %v964_v17  ;;  %v682_v38 = vpop.f32.mrb[23].mxu1  ;;  %1188 = vmatprep.subr.bf16.mxu0 %v1394_v16  ;;  %v732_v40 = vmax.f32 %v688_v33, 0.0 }
 0x41d   :  { %v683_v39 = vadd.f32 %v964_v17, %v682_v38  ;;  %v730_v42 = vmax.f32 %v680_v35, 0.0 }
 0x41e   :  { %v733_v41 = vmax.f32 %v691_v37, 0.0 }
 0x41f   :  { %v731_v43 = vmax.f32 %v683_v39, 0.0  ;;  %1189 = vmatpush3.bf16.msra.mxu0 %v743_v30 }
 0x420   :  { %v745_v44 = vpack.c.bf16 %v733_v41, %v732_v40  ;;  %1190 = vmatprep.subr.bf16.mxu0 %v1394_v16 }
 0x421   :  { %v744_v45 = vpack.c.bf16 %v731_v43, %v730_v42  ;;  %v1180_v46 = vpop.f32.mrb[24].mxu1 }
 0x422   :  { %v704_v54 = vadd.f32 %v1180_v46, %v964_v17  ;;  %v695_v55 = vpop.f32.mrb[25].mxu1 }
 0x423   :  { %v696_v57 = vadd.f32 %v964_v17, %v695_v55  ;;  %v1181_v58 = vpop.f32.mrb[26].mxu1  ;;  %1191 = vmatpush3.bf16.msra.mxu0 %v744_v45 }
 0x424   :  { %v707_v59 = vadd.f32 %v1181_v58, %v964_v17  ;;  %v698_v60 = vpop.f32.mrb[27].mxu1  ;;  %1192 = vmatprep.subr.bf16.mxu0 %v1394_v16  ;;  %v736_v62 = vmax.f32 %v704_v54, 0.0 }
 0x425   :  { %v699_v61 = vadd.f32 %v964_v17, %v698_v60  ;;  %v734_v0 = vmax.f32 %v696_v57, 0.0 }
 0x426   :  { %v737_v63 = vmax.f32 %v707_v59, 0.0 }
 0x427   :  { %v735_v56 = vmax.f32 %v699_v61, 0.0  ;;  %1193 = vmatpush3.bf16.msra.mxu0 %v745_v44 }
 0x428   :  { %v747_v1 = vpack.c.bf16 %v737_v63, %v736_v62  ;;  %1194 = vmatprep.subr.bf16.mxu0 %v1394_v16 }
 0x429   :  { %v746_v2 = vpack.c.bf16 %v735_v56, %v734_v0  ;;  %v1184_v3 = vpop.f32.mrb[28].mxu1 }
 0x42a   :  { %v720_v4 = vadd.f32 %v1184_v3, %v964_v17  ;;  %v711_v5 = vpop.f32.mrb[29].mxu1 }
 0x42b   :  { %v712_v6 = vadd.f32 %v964_v17, %v711_v5  ;;  %v1185_v7 = vpop.f32.mrb[30].mxu1  ;;  %1195 = vmatpush3.bf16.msra.mxu0 %v746_v2 }
 0x42c   :  { %v723_v8 = vadd.f32 %v1185_v7, %v964_v17  ;;  %v714_v9 = vpop.f32.mrb[31].mxu1  ;;  %1196 = vmatprep.subr.bf16.mxu0 %v1394_v16  ;;  %v740_v11 = vmax.f32 %v720_v4, 0.0 }
 0x42d   :  { %v715_v10 = vadd.f32 %v964_v17, %v714_v9  ;;  %v738_v13 = vmax.f32 %v712_v6, 0.0 }
 0x42e   :  { %v741_v12 = vmax.f32 %v723_v8, 0.0 }
 0x42f   :  { %v739_v14 = vmax.f32 %v715_v10, 0.0  ;;  %1197 = vmatpush3.bf16.msra.mxu0 %v747_v1 }
 0x430   :  { %v749_v15 = vpack.c.bf16 %v741_v12, %v740_v11  ;;  %1198 = vmatprep.subr.bf16.mxu0 %v1394_v16 }
 0x431   :  { %v748_v47 = vpack.c.bf16 %v739_v14, %v738_v13 }
 0x433   :  { %1199 = vmatpush3.bf16.msra.mxu0 %v748_v47 }
 0x434   :  { %1200 = vmatprep.subr.bf16.mxu0 %v1394_v16 }
 0x437   :  { %1201 = vmatpush3.bf16.msra.mxu0 %v749_v15 }
 0x43a   :  { %1203 = vmatmul.mubr.bf16.vlgmr.msra.gmra.mrb[32].mxu0 %v1261_v48 }
 0x50d   :  { %v792_v50 = vpop.f32.mrb[32].mxu0 }
 0x50e   :  { %v1204_v51 = vpop.f32.mrb[33].mxu0 }
 0x50f   :  { %v795_v52 = vpop.f32.mrb[34].mxu0 }
 0x510   :  { %v799_v53 = vpack.c.bf16 %v795_v52, %v792_v50  ;;  %v1205_v17 = vpop.f32.mrb[35].mxu0 }
 0x512   :  { %1223 = vmatmul.mubr.bf16.vlgmr.msra.gmra.mrb[32].mxu1 %v799_v53 }
 0x5e5   :  { %v905_v16 = vpop.f32.mrb[32].mxu1 }
 0x5e6   :  { %v906_v19 = vadd.f32 %v966_v18, %v905_v16  ;;  %v1224_v20 = vpop.f32.mrb[33].mxu1 }
 0x5e7   :  { %v908_v21 = vpop.f32.mrb[34].mxu1 }
 0x5e8   :  { %912 = vst [vmem:[#allocation10] sm:$0xff] %v906_v19  ;;  %v909_v22 = vadd.f32 %v966_v18, %v908_v21  ;;  %v1225_v23 = vpop.f32.mrb[35].mxu1 }
 0x5ea   :  { %913 = vst [vmem:[#allocation10 + $0x8] sm:$0xff] %v909_v22 }
 0x5eb   :  { %1369 = shalt.err (!%p1366_p8)
}
 0x5ec   :  { %s1370_s11 = scalar_lea.hbm %s1580_s7, 256 }
 0x5ed   :  { %p1371_p9 = scmp.ne.s32.totalorder %s1580_s7, %s1370_s11  ;;  %p1374_p10 = scmp.lt.u32.totalorder %s1370_s11, %s1580_s7 }
 0x5ef   :  { %p1376_p11 = pnand %p1374_p10, %p1371_p9 }
 0x5f1   :  { %1379 = shalt.err (!%p1376_p11)
}
 0x5f2   :  { %s1397_s5 = smov 128   ;;  %s1398_s13 = smov 8  }
 0x5f3   :  { %925 = dma.vmem_to_hbm [thread:$0]  %s920_s9, 256, %s1580_s7, [#allocation6], %s1397_s5, %s1397_s5, %s1398_s13  }
 0x5f4   :  { %1386 = dma.done.wait [#allocation6], 256  }
 0x5f5   :  { %1387 = vsyncadd [#allocation6], 4294967040 }
 0x5f6   :  { %929 = vsyncpa [#allocation5], 1 }
 0x5f7   :  { %930 = vsyncpa [#allocation8], 1 }
 0x5f8   :  { %931 = vsyncpa [#allocation6], 1 }
 0x5f9   :  { %932 = vsyncmov [#allocation3] }
 0x5fc   :  { %s933_s17 = vpop.sfrf %932 }
 0x5fd   :  { %p975_p12 = scmp.ne.s32.totalorder %s933_s17, 0 }
 0x5ff   :  { %937 = shalt.err (%p975_p12)  }

</bundles_post_ra>
